<compile_context>
chip_gen: v6e
topology: v6e:2x2x1
jax: 0.10.0
libtpu: 0.0.40
codegen_flags: <defaults>
</compile_context>

<pallas_src>
import jax
import jax.numpy as jnp
from jax import lax
from jax.experimental import pallas as pl
from jax.experimental.pallas import tpu as pltpu

# ---- config (small, consistent with the module's __init__) ----
HIDDEN_SIZE = 32      # __C.HIDDEN_SIZE
FLAT_MLP_SIZE = 64    # __C.FLAT_MLP_SIZE
FLAT_GLIMPSES = 1     # __C.FLAT_GLIMPSES
FLAT_OUT_SIZE = 64    # __C.FLAT_OUT_SIZE
BATCH = 2
SEQ = 8


def attflat_kernel(x_ref, mask_ref,
                   w1_ref, b1_ref, w2t_ref, b2_ref, wm_ref, bm_ref,
                   out_ref):
    Bp, S, H = x_ref.shape          # batch already padded to a multiple of 8
    G = w2t_ref.shape[0]            # w2 passed transposed: (G, MID)

    x = x_ref[...].astype(jnp.float32)      # (Bp, S, H)
    mask = mask_ref[...]                    # (Bp, S, 1), 1.0 == masked

    # ---- MLP layer 1, fused across the whole batch: one (Bp*S, H) @ (H, MID) matmul.
    x2d = x.reshape(Bp * S, H)
    h = jnp.dot(x2d, w1_ref[...], preferred_element_type=jnp.float32) + b1_ref[...]
    h = jnp.maximum(h, 0.0)                 # (Bp*S, MID)

    # ---- MLP layer 2 (MID -> G). For G == 1 keep it off the MXU: VPU multiply +
    # lane (XLU) reduce instead of an N=1 matmul.
    if G == 1:
        logits = jnp.sum(h * w2t_ref[...], axis=-1, keepdims=True) + b2_ref[...]
    else:
        logits = lax.dot_general(h, w2t_ref[...], (((1,), (1,)), ((), ())),
                                 preferred_element_type=jnp.float32) + b2_ref[...]
    logits = logits.reshape(Bp, S, G)

    # masked_fill(mask, -1e9)
    logits = jnp.where(mask > 0.5, jnp.float32(-1e9), logits)

    # softmax over the sequence axis (torch dim=1); reduction over sublanes (XLU).
    m = jnp.max(logits, axis=1, keepdims=True)              # (Bp, 1, G)
    e = jnp.exp(logits - m)                                 # (Bp, S, G)  EUP
    inv = pl.reciprocal(jnp.sum(e, axis=1, keepdims=True), approx=True)  # EUP slot

    # ---- glimpse-weighted sum over sequence; normalization folded in once at the end.
    if G == 1:
        weighted = jnp.sum(e * x, axis=1)                   # (Bp, H)  VPU mul + XLU reduce
        flat = weighted * inv[:, 0, :]                      # (Bp, G*H)
    else:
        att = e * inv
        atted = jnp.einsum('bsg,bsh->bgh', att, x,
                           preferred_element_type=jnp.float32)
        flat = atted.reshape(Bp, G * H)

    # ---- linear_merge: (Bp, G*H) @ (G*H, OUT_pad); lane/sublane-dense single store.
    out = jnp.dot(flat, wm_ref[...], preferred_element_type=jnp.float32) + bm_ref[...]
    out_ref[...] = out.astype(out_ref.dtype)


def attflat(x, mask, w1, b1, w2, b2, wm, bm):
    """x: (B,S,H); mask: (B,S,1) with 1.0 == padded; weights stored as (in, out)."""
    B, S, H = x.shape
    MID, G = w2.shape
    OUT = wm.shape[1]

    # Layout plumbing in the wrapper so the kernel sees dense tiles:
    #   * batch padded to a multiple of 8 sublanes (padded rows fully masked, x zero),
    #   * merge-output padded to a multiple of 128 lanes (padded weight cols are zero),
    # giving a single unmasked (8k, 128m) output store; padding is sliced off below.
    B_pad = ((B + 7) // 8) * 8
    OUT_pad = ((OUT + 127) // 128) * 128

    x_p = jnp.pad(x, ((0, B_pad - B), (0, 0), (0, 0)))
    mask_p = jnp.pad(mask, ((0, B_pad - B), (0, 0), (0, 0)), constant_values=1.0)
    wm_p = jnp.pad(wm, ((0, 0), (0, OUT_pad - OUT)))
    bm_p = jnp.pad(bm, ((0, 0), (0, OUT_pad - OUT)))
    w2t = w2.T    # (G, MID): lets the G==1 path broadcast without an in-kernel reshape

    vmem = pl.BlockSpec(memory_space=pltpu.MemorySpace.VMEM)
    out_p = pl.pallas_call(
        attflat_kernel,
        out_shape=jax.ShapeDtypeStruct((B_pad, OUT_pad), jnp.float32),
        in_specs=[vmem] * 8,
        out_specs=vmem,
    )(x_p, mask_p, w1, b1, w2t, b2, wm_p, bm_p)

    return out_p[:B, :OUT]


def attflat_ref(x, mask, w1, b1, w2, b2, wm, bm):
    """Pure-JAX reference mirroring the PyTorch forward (eval mode)."""
    h = jnp.maximum(jnp.einsum('bsh,hm->bsm', x, w1) + b1, 0.0)
    att = jnp.einsum('bsm,mg->bsg', h, w2) + b2
    att = jnp.where(mask > 0.5, -1e9, att)
    att = jax.nn.softmax(att, axis=1)
    atted = jnp.einsum('bsg,bsh->bgh', att, x)          # (B, G, H)
    flat = atted.reshape(x.shape[0], -1)                # (B, G*H)
    return flat @ wm + bm


if __name__ == "__main__":
    key = jax.random.PRNGKey(0)
    kx, km, k1, k2, k3, k4, k5, k6 = jax.random.split(key, 8)

    # inputs
    x = jax.random.normal(kx, (BATCH, SEQ, HIDDEN_SIZE), dtype=jnp.float32)
    # mask: last 2 positions of every sequence are padded (1.0 == masked)
    seq_ids = jnp.arange(SEQ)
    mask = (seq_ids >= SEQ - 2).astype(jnp.float32)[None, :, None]
    mask = jnp.broadcast_to(mask, (BATCH, SEQ, 1)).astype(jnp.float32)

    # deterministic parameter init (shapes from the module's __init__, (in, out) layout)
    w1 = 0.1 * jax.random.normal(k1, (HIDDEN_SIZE, FLAT_MLP_SIZE), dtype=jnp.float32)
    b1 = 0.1 * jax.random.normal(k2, (1, FLAT_MLP_SIZE), dtype=jnp.float32)
    w2 = 0.1 * jax.random.normal(k3, (FLAT_MLP_SIZE, FLAT_GLIMPSES), dtype=jnp.float32)
    b2 = 0.1 * jax.random.normal(k4, (1, FLAT_GLIMPSES), dtype=jnp.float32)
    wm = 0.1 * jax.random.normal(k5, (FLAT_GLIMPSES * HIDDEN_SIZE, FLAT_OUT_SIZE),
                                 dtype=jnp.float32)
    bm = 0.1 * jax.random.normal(k6, (1, FLAT_OUT_SIZE), dtype=jnp.float32)

    out = attflat(x, mask, w1, b1, w2, b2, wm, bm)
    out = jax.block_until_ready(out)

    ref = attflat_ref(x, mask, w1, b1, w2, b2, wm, bm)
    assert out.shape == (BATCH, FLAT_OUT_SIZE)
    # Tolerance accounts for the EUP approximate reciprocal used for the softmax
    # normalization (relative error far below 5e-3; structural bugs would be >> this).
    assert jnp.allclose(out, ref, atol=5e-3, rtol=5e-3), "mismatch vs reference"

    print("KERNEL_OK")
</pallas_src>

<mosaic_0001>
module attributes {stable_mosaic.version = 11 : i64} {
  func.func @attflat_kernel(%arg0: memref<8x8x32xf32, #tpu.memory_space<vmem>>, %arg1: memref<8x8x1xf32, #tpu.memory_space<vmem>>, %arg2: memref<32x64xf32, #tpu.memory_space<vmem>>, %arg3: memref<1x64xf32, #tpu.memory_space<vmem>>, %arg4: memref<1x64xf32, #tpu.memory_space<vmem>>, %arg5: memref<1x1xf32, #tpu.memory_space<vmem>>, %arg6: memref<32x128xf32, #tpu.memory_space<vmem>>, %arg7: memref<1x128xf32, #tpu.memory_space<vmem>>, %arg8: memref<8x128xf32, #tpu.memory_space<vmem>>) attributes {dimension_semantics = [], scalar_prefetch = 0 : i64, scratch_operands = 0 : i64, tpu.core_type = #tpu.core_type<tc>} {
    %c0 = arith.constant 0 : index
    %c0_0 = arith.constant 0 : index
    %c0_1 = arith.constant 0 : index
    %0 = vector.load %arg0[%c0, %c0_0, %c0_1] : memref<8x8x32xf32, #tpu.memory_space<vmem>>, vector<8x8x32xf32>
    %c0_2 = arith.constant 0 : index
    %c0_3 = arith.constant 0 : index
    %c0_4 = arith.constant 0 : index
    %1 = vector.load %arg1[%c0_2, %c0_3, %c0_4] : memref<8x8x1xf32, #tpu.memory_space<vmem>>, vector<8x8x1xf32>
    %2 = vector.shape_cast %0 : vector<8x8x32xf32> to vector<64x32xf32>
    %c0_5 = arith.constant 0 : index
    %c0_6 = arith.constant 0 : index
    %3 = vector.load %arg2[%c0_5, %c0_6] : memref<32x64xf32, #tpu.memory_space<vmem>>, vector<32x64xf32>
    %cst = arith.constant dense<0.000000e+00> : vector<64x64xf32>
    %4 = tpu.matmul %2, %3, %cst {dimension_numbers = #tpu.dot_dimension_numbers<[1], [0], [0], [1], [0, 0, 1, 1], [], []>} : vector<64x32xf32>, vector<32x64xf32>, vector<64x64xf32> -> vector<64x64xf32>
    %c0_7 = arith.constant 0 : index
    %c0_8 = arith.constant 0 : index
    %5 = vector.load %arg3[%c0_7, %c0_8] : memref<1x64xf32, #tpu.memory_space<vmem>>, vector<1x64xf32>
    %6 = vector.broadcast %5 : vector<1x64xf32> to vector<64x64xf32>
    %7 = arith.addf %4, %6 : vector<64x64xf32>
    %cst_9 = arith.constant 0.000000e+00 : f32
    %8 = vector.broadcast %cst_9 : f32 to vector<64x64xf32>
    %9 = arith.maximumf %7, %8 : vector<64x64xf32>
    %c0_10 = arith.constant 0 : index
    %c0_11 = arith.constant 0 : index
    %10 = vector.load %arg4[%c0_10, %c0_11] : memref<1x64xf32, #tpu.memory_space<vmem>>, vector<1x64xf32>
    %11 = vector.broadcast %10 : vector<1x64xf32> to vector<64x64xf32>
    %12 = arith.mulf %9, %11 : vector<64x64xf32>
    %cst_12 = arith.constant dense<0.000000e+00> : vector<64xf32>
    %13 = vector.multi_reduction <add>, %12, %cst_12 [1] : vector<64x64xf32> to vector<64xf32>
    %14 = vector.shape_cast %13 : vector<64xf32> to vector<64x1xf32>
    %c0_13 = arith.constant 0 : index
    %c0_14 = arith.constant 0 : index
    %15 = vector.load %arg5[%c0_13, %c0_14] : memref<1x1xf32, #tpu.memory_space<vmem>>, vector<1x1xf32>
    %16 = vector.broadcast %15 : vector<1x1xf32> to vector<64x1xf32>
    %17 = arith.addf %14, %16 : vector<64x1xf32>
    %18 = vector.shape_cast %17 : vector<64x1xf32> to vector<8x8x1xf32>
    %cst_15 = arith.constant 5.000000e-01 : f32
    %19 = vector.broadcast %cst_15 : f32 to vector<8x8x1xf32>
    %20 = arith.cmpf ogt, %1, %19 : vector<8x8x1xf32>
    %cst_16 = arith.constant -1.000000e+09 : f32
    %21 = vector.broadcast %cst_16 : f32 to vector<8x8x1xf32>
    %22 = arith.select %20, %21, %18 : vector<8x8x1xi1>, vector<8x8x1xf32>
    %cst_17 = arith.constant dense<0xFF800000> : vector<8x1xf32>
    %23 = vector.multi_reduction <maximumf>, %22, %cst_17 [1] : vector<8x8x1xf32> to vector<8x1xf32>
    %24 = vector.shape_cast %23 : vector<8x1xf32> to vector<8x1x1xf32>
    %25 = vector.broadcast %24 : vector<8x1x1xf32> to vector<8x8x1xf32>
    %26 = arith.subf %22, %25 : vector<8x8x1xf32>
    %27 = math.exp %26 : vector<8x8x1xf32>
    %cst_18 = arith.constant dense<0.000000e+00> : vector<8x1xf32>
    %28 = vector.multi_reduction <add>, %27, %cst_18 [1] : vector<8x8x1xf32> to vector<8x1xf32>
    %29 = vector.shape_cast %28 : vector<8x1xf32> to vector<8x1x1xf32>
    %30 = tpu.reciprocal %29 {approx = true} : vector<8x1x1xf32> -> vector<8x1x1xf32>
    %31 = vector.broadcast %27 : vector<8x8x1xf32> to vector<8x8x32xf32>
    %32 = arith.mulf %31, %0 : vector<8x8x32xf32>
    %cst_19 = arith.constant dense<0.000000e+00> : vector<8x32xf32>
    %33 = vector.multi_reduction <add>, %32, %cst_19 [1] : vector<8x8x32xf32> to vector<8x32xf32>
    %34 = vector.shape_cast %30 : vector<8x1x1xf32> to vector<8x1xf32>
    %35 = vector.broadcast %34 : vector<8x1xf32> to vector<8x32xf32>
    %36 = arith.mulf %33, %35 : vector<8x32xf32>
    %c0_20 = arith.constant 0 : index
    %c0_21 = arith.constant 0 : index
    %37 = vector.load %arg6[%c0_20, %c0_21] : memref<32x128xf32, #tpu.memory_space<vmem>>, vector<32x128xf32>
    %cst_22 = arith.constant dense<0.000000e+00> : vector<8x128xf32>
    %38 = tpu.matmul %36, %37, %cst_22 {dimension_numbers = #tpu.dot_dimension_numbers<[1], [0], [0], [1], [0, 0, 1, 1], [], []>} : vector<8x32xf32>, vector<32x128xf32>, vector<8x128xf32> -> vector<8x128xf32>
    %c0_23 = arith.constant 0 : index
    %c0_24 = arith.constant 0 : index
    %39 = vector.load %arg7[%c0_23, %c0_24] : memref<1x128xf32, #tpu.memory_space<vmem>>, vector<1x128xf32>
    %40 = vector.broadcast %39 : vector<1x128xf32> to vector<8x128xf32>
    %41 = arith.addf %38, %40 : vector<8x128xf32>
    %c0_25 = arith.constant 0 : index
    %c0_26 = arith.constant 0 : index
    %42 = vector.load %arg8[%c0_25, %c0_26] : memref<8x128xf32, #tpu.memory_space<vmem>>, vector<8x128xf32>
    tpu.vector_store %arg8[%c0_25, %c0_26], %41 {strides = array<i32>} : memref<8x128xf32, #tpu.memory_space<vmem>>, vector<8x128xf32>,
    return
  }
}

</mosaic_0001>

<bundles_post_ra>
// kernel: tpu_custom_call.1
= control target key start
LH: loop header
LB: loop body
LE: loop exit
PB: predicated region body
PF: predicated region fallthrough
CT: control target
= control target key end

     0   :  { %s1101_s0 = inlined_call_operand.vmem [shape: f32[8,8,32], index: 0, kind: input, shape index: {}]   ;;  %s1102_s1 = inlined_call_operand.vmem [shape: f32[8,8,1], index: 1, kind: input, shape index: {}]   ;;  %s1103_s2 = inlined_call_operand.hbm [shape: f32[32,64], index: 2, kind: input, shape index: {}]   ;;  %s1104_s3 = inlined_call_operand.vmem [shape: f32[1,64], index: 3, kind: input, shape index: {}]   ;;  %s1105_s4 = inlined_call_operand.vmem [shape: f32[1,64], index: 4, kind: input, shape index: {}]   ;;  %s1106_s5 = inlined_call_operand.<no memory space> [shape: f32[1,1], index: 5, kind: input, shape index: {}]   ;;  %s1107_s6 = inlined_call_operand.hbm [shape: f32[32,128], index: 6, kind: input, shape index: {}]   ;;  %s1108_s7 = inlined_call_operand.vmem [shape: f32[1,128], index: 7, kind: input, shape index: {}]   ;;  %s1109_s8 = inlined_call_operand.hbm [shape: f32[8,128], index: 8, kind: output, shape index: {}]  }
   0x1   :  { %v13_v0 = vstv %s1106_s5 }
   0x2   :  { %14 = vst [vmem:[#allocation2] sm:$0x1] %v13_v0 }
   0x3   :  { %15 = vsyncpa [#allocation4], 0 }
   0x4   :  { %16 = vsyncpa [#allocation7], 0 }
   0x5   :  { %17 = vsyncpa [#allocation5], 0  ;;  %s884_s29 = smov [#allocation3]  }
   0x6   :  { %s27_s30 = sshll.u32 %s884_s29, 4  ;;  %s28_s30 = int_to_ptr.vmem [resolvable:$true] %s27_s30 }
   0x7   :  { %s826_s9 = scalar_lea.vmem %s28_s30, 512  ;;  %p831_p1 = scmp.lt.s32.totalorder %s28_s30, %s28_s30 }
   0x8   :  { %p827_p0 = scmp.ne.s32.totalorder %s28_s30, %s826_s9  ;;  %p832_p2 = scmp.lt.s32.totalorder %s826_s9, %s826_s9 }
   0xa   :  { %p833_p3 = por %p832_p2, %p831_p1 }
   0xc   :  { %p834_p4 = pnand %p833_p3, %p827_p0 }
   0xe   :  { %837 = shalt.err (!%p834_p4)
}
   0xf   :  { %s885_s10 = smov 128   ;;  %s886_s11 = smov 8  }
  0x10   :  { %33 = dma.hbm_to_vmem [thread:$0]  %s1103_s2, 512, %s28_s30, [#allocation4], %s885_s10, %s885_s10, %s886_s11  }
  0x11   :  { %s887_s5 = smov [#allocation6]  }
  0x12   :  { %s45_s14 = sshll.u32 %s887_s5, 4  ;;  %s46_s14 = int_to_ptr.vmem [resolvable:$true] %s45_s14 }
  0x13   :  { %s846_s15 = scalar_lea.vmem %s46_s14, 512  ;;  %p851_p6 = scmp.lt.s32.totalorder %s46_s14, %s46_s14 }
  0x14   :  { %p847_p5 = scmp.ne.s32.totalorder %s46_s14, %s846_s15  ;;  %p852_p7 = scmp.lt.s32.totalorder %s846_s15, %s846_s15 }
  0x16   :  { %p853_p8 = por %p852_p7, %p851_p6 }
  0x18   :  { %p854_p9 = pnand %p853_p8, %p847_p5 }
  0x1a   :  { %857 = shalt.err (!%p854_p9)
}
  0x1b   :  { %51 = dma.hbm_to_vmem [thread:$0]  %s1107_s6, 512, %s46_s14, [#allocation7], %s885_s10, %s885_s10, %s886_s11  }
  0x1c   :  { %878 = dma.done.wait [#allocation4], 512  }
  0x1d   :  { %879 = vsyncadd [#allocation4], 4294966784 }
  0x1e   :  { %880 = dma.done.wait [#allocation7], 512  }
  0x1f   :  { %881 = vsyncadd [#allocation7], 4294966784  ;;  %vm87_vm0 = vcmask 261120   ;;  %v79_v1 = vld [vmem:[#allocation3 + $0x18] sm:$0xff]  ;;  %v78_v2 = vld [vmem:[#allocation3 + $0x10] sm:$0xff]  ;;  %vm240_vm1 = vcmask 523264  }
  0x20   :  { %745 = vmatprep.subr.mxu0 %v79_v1  ;;  %v949_v3 = vld [vmem:[%s1101_s0] sm:$0xff]  ;;  %v77_v4 = vld [vmem:[#allocation3 + $0x8] sm:$0xff]  ;;  %v970_v8 = vld [vmem:[%s1101_s0 + $0x18] sm:$0xff]  ;;  %v888_v55 = vmov 0   ;;  %vm296_vm3 = vcmask 7168   ;;  %vm890_vm11 = vmmov 0  }
  0x21   :  { %746 = vmatpush3.msra.mxu0 %v79_v1  ;;  %753 = vmatprep.mubr.msk.f32.mxu0 %vm87_vm0, %v949_v3  ;;  %v76_v5 = vld [vmem:[#allocation3] sm:$0xff]  ;;  %v961_v7 = vld [vmem:[%s1101_s0 + $0x10] sm:$0xff]  ;;  %v998_v12 = vld [vmem:[%s1101_s0 + $0x38] sm:$0xff]  ;;  %vm612_vm12 = vcmask 1041409   ;;  %vm614_vm13 = vcmask 1042434   ;;  %vm616_vm14 = vcmask 1043459  }
  0x22   :  { %747 = vmatprep.subr.mxu0 %v78_v2  ;;  %v956_v6 = vld [vmem:[%s1101_s0 + $0x8] sm:$0xff]  ;;  %v975_v9 = vld [vmem:[%s1101_s0 + $0x20] sm:$0xff]  ;;  %v989_v11 = vld [vmem:[%s1101_s0 + $0x30] sm:$0xff]  ;;  %785 = vset.pattern.permute.xlu1 %v888_v55  ;;  %vm618_vm15 = vcmask 1044484   ;;  %s891_s25 = smov [#allocation8]  }
  0x23   :  { %748 = vmatpush3.msra.mxu0 %v78_v2  ;;  %v984_v10 = vld [vmem:[%s1101_s0 + $0x28] sm:$0xff]  ;;  %v715_v13 = vld [vmem:[%s1104_s3] ss:$0 sm:$0xff]  ;;  %784 = vset.pattern.permute.xlu0 %v888_v55  ;;  %v71_v60 = vld [vmem:[%s1102_s1 + $0x18] sm:$0xff]  ;;  %s705_s26 = sshll.u32 %s891_s25, 4  ;;  %s706_s26 = int_to_ptr.vmem [resolvable:$true] %s705_s26 }
  0x24   :  { %749 = vmatprep.subr.mxu0 %v77_v4  ;;  %v724_v17 = vld [vmem:[%s1105_s4] ss:$0 sm:$0xff]  ;;  %v69_v56 = vld [vmem:[%s1102_s1 + $0x8] sm:$0xff]  ;;  %vm283_vm4 = vcmp.gt.f32.partialorder %v71_v60, 0.5  ;;  %s858_s27 = scalar_lea.vmem %s706_s26, 128  ;;  %p863_p11 = scmp.lt.s32.totalorder %s706_s26, %s706_s26 }
  0x25   :  { %750 = vmatpush3.msra.mxu0 %v77_v4  ;;  %v1019_v57 = vld [vmem:[#allocation2] ss:$0 sm:$0xff]  ;;  %vm281_vm2 = vcmp.gt.f32.partialorder %v69_v56, 0.5  ;;  %p859_p10 = scmp.ne.s32.totalorder %s706_s26, %s858_s27  ;;  %p864_p12 = scmp.lt.s32.totalorder %s858_s27, %s858_s27 }
  0x26   :  { %751 = vmatprep.subr.mxu0 %v76_v5  ;;  %v68_v61 = vld [vmem:[%s1102_s1] sm:$0xff] }
  0x27   :  { %752 = vmatpush3.msra.mxu0 %v76_v5  ;;  %vm280_vm5 = vcmp.gt.f32.partialorder %v68_v61, 0.5  ;;  %p865_p13 = por %p864_p12, %p863_p11 }
  0x28   :  { %754 = vmatmul.mubr.msk.f32.vlgmr.msra.gmra.mxu0 %vm87_vm0, %v956_v6 }
  0x29   :  { %756 = vmatprep.mubr.msk.f32.mxu0 %vm87_vm0, %v961_v7  ;;  %p866_p0 = pnand %p865_p13, %p859_p10 }
  0x2c   :  { %757 = vmatmul.mubr.msk.f32.gmra.mxu0 %vm87_vm0, %v970_v8 }
  0x2d   :  { %759 = vmatprep.mubr.msk.f32.mxu0 %vm87_vm0, %v975_v9 }
  0x30   :  { %760 = vmatmul.mubr.msk.f32.gmra.mxu0 %vm87_vm0, %v984_v10 }
  0x31   :  { %762 = vmatprep.mubr.msk.f32.mxu0 %vm87_vm0, %v989_v11 }
  0x34   :  { %763 = vmatmul.mubr.msk.f32.gmra.mxu0 %vm87_vm0, %v998_v12 }
  0xe8   :  { %v755_v14 = vpop.f32.mrf.mxu0 }
  0xe9   :  { %v184_v15 = vadd.f32 %v755_v14, %v715_v13 }
  0xea   :  { %v178_v16 = vpop.f32.mrf.mxu0 }
  0xeb   :  { %v218_v18 = vmax.f32 %v184_v15, 0.0  ;;  %v179_v19 = vadd.f32 %v715_v13, %v178_v16 }
  0xec   :  { %v758_v20 = vpop.f32.mrf.mxu0 }
  0xed   :  { %v217_v21 = vmax.f32 %v179_v19, 0.0  ;;  %v194_v22 = vadd.f32 %v758_v20, %v715_v13  ;;  %v233_v23 = vmul.f32 %v724_v17, %v218_v18 }
  0xee   :  { %v188_v24 = vpop.f32.mrf.mxu0 }
  0xef   :  { %v220_v25 = vmax.f32 %v194_v22, 0.0  ;;  %v189_v26 = vadd.f32 %v715_v13, %v188_v24  ;;  %v244_v27 = vsel %vm240_vm1, %v233_v23, 0.0  ;;  %v232_v28 = vmul.f32 %v724_v17, %v217_v21 }
  0xf0   :  { %245 = vadd.xlane.f32.xlu0 %v244_v27  ;;  %v761_v29 = vpop.f32.mrf.mxu0 }
  0xf1   :  { %v219_v30 = vmax.f32 %v189_v26, 0.0  ;;  %v204_v31 = vadd.f32 %v761_v29, %v715_v13  ;;  %v235_v32 = vmul.f32 %v724_v17, %v220_v25  ;;  %v241_v34 = vsel %vm240_vm1, %v232_v28, 0.0  ;;  %v73_v25 = vld [vmem:[%s1102_s1 + $0x28] sm:$0xff] }
  0xf2   :  { %v198_v33 = vpop.f32.mrf.mxu0  ;;  %vm285_vm8 = vcmp.gt.f32.partialorder %v73_v25, 0.5 }
  0xf3   :  { %v222_v35 = vmax.f32 %v204_v31, 0.0  ;;  %v199_v36 = vadd.f32 %v715_v13, %v198_v33  ;;  %v250_v37 = vsel %vm240_vm1, %v235_v32, 0.0  ;;  %v234_v38 = vmul.f32 %v724_v17, %v219_v30  ;;  %v74_v31 = vld [vmem:[%s1102_s1 + $0x30] sm:$0xff] }
  0xf4   :  { %251 = vadd.xlane.f32.xlu1 %v250_v37  ;;  %v764_v39 = vpop.f32.mrf.mxu0  ;;  %242 = vadd.xlane.f32.xlu0 %v241_v34  ;;  %vm286_vm9 = vcmp.gt.f32.partialorder %v74_v31, 0.5 }
  0xf5   :  { %v221_v40 = vmax.f32 %v199_v36, 0.0  ;;  %v214_v41 = vadd.f32 %v764_v39, %v715_v13  ;;  %v247_v43 = vsel %vm240_vm1, %v234_v38, 0.0  ;;  %v237_v47 = vmul.f32 %v724_v17, %v222_v35  ;;  %v75_v39 = vld [vmem:[%s1102_s1 + $0x38] sm:$0xff] }
  0xf6   :  { %v208_v42 = vpop.f32.mrf.mxu0  ;;  %vm287_vm10 = vcmp.gt.f32.partialorder %v75_v39, 0.5 }
  0xf7   :  { %v224_v44 = vmax.f32 %v214_v41, 0.0  ;;  %v209_v45 = vadd.f32 %v715_v13, %v208_v42  ;;  %v236_v46 = vmul.f32 %v724_v17, %v221_v40  ;;  %v256_v50 = vsel %vm240_vm1, %v237_v47, 0.0  ;;  %v70_v13 = vld [vmem:[%s1102_s1 + $0x10] sm:$0xff] }
  0xf8   :  { %248 = vadd.xlane.f32.xlu1 %v247_v43  ;;  %vm282_vm6 = vcmp.gt.f32.partialorder %v70_v13, 0.5 }
  0xf9   :  { %v223_v48 = vmax.f32 %v209_v45, 0.0  ;;  %v253_v49 = vsel %vm240_vm1, %v236_v46, 0.0  ;;  %v239_v52 = vmul.f32 %v724_v17, %v224_v44 }
  0xfa   :  { %254 = vadd.xlane.f32.xlu0 %v253_v49 }
  0xfb   :  { %v238_v51 = vmul.f32 %v724_v17, %v223_v48  ;;  %v262_v54 = vsel %vm240_vm1, %v239_v52, 0.0  ;;  %v72_v17 = vld [vmem:[%s1102_s1 + $0x20] sm:$0xff] }
  0xfc   :  { %257 = vadd.xlane.f32.xlu1 %v256_v50  ;;  %vm284_vm7 = vcmp.gt.f32.partialorder %v72_v17, 0.5 }
  0xfd   :  { %v259_v53 = vsel %vm240_vm1, %v238_v51, 0.0  ;;  %vm620_vm1 = vcmask 1045509  }
  0xfe   :  { %260 = vadd.xlane.f32.xlu0 %v259_v53 }
 0x100   :  { %263 = vadd.xlane.f32.xlu1 %v262_v54 }
 0x179   :  { %v246_v58 = vpop.xlane.xlu0 %245 }
 0x17a   :  { %v273_v59 = vadd.f32 %v1019_v57, %v246_v58 }
 0x17c   :  { %v289_v62 = vsel %vm281_vm2, -1e+09, %v273_v59  ;;  %vm622_vm2 = vcmask 1046534  }
 0x17d   :  { %v304_v63 = vsel %vm296_vm3, %v289_v62, -inf  ;;  %v252_v0 = vpop.xlane.xlu1 %251  ;;  %v243_v1 = vpop.xlane.xlu0 %242 }
 0x17e   :  { %v305_v2 = vrot.slane %v304_v63, 4  ;;  %v275_v4 = vadd.f32 %v1019_v57, %v252_v0  ;;  %v272_v5 = vadd.f32 %v1019_v57, %v243_v1 }
 0x180   :  { %v306_v14 = vmax.f32 %v304_v63, %v305_v2  ;;  %v1034_v15 = vsel %vm283_vm4, -1e+09, %v275_v4  ;;  %v1036_v16 = vsel %vm280_vm5, -1e+09, %v272_v5 }
 0x181   :  { %v318_v18 = vsel %vm296_vm3, %v1034_v15, -inf  ;;  %v297_v19 = vsel %vm296_vm3, %v1036_v16, -inf  ;;  %v249_v20 = vpop.xlane.xlu1 %248 }
 0x182   :  { %v307_v21 = vrot.slane %v306_v14, 2  ;;  %v319_v22 = vrot.slane %v318_v18, 4  ;;  %v298_v23 = vrot.slane %v297_v19, 4  ;;  %v274_v24 = vadd.f32 %v1019_v57, %v249_v20 }
 0x183   :  { %v255_v26 = vpop.xlane.xlu0 %254 }
 0x184   :  { %v308_v27 = vmax.f32 %v306_v14, %v307_v21  ;;  %v320_v28 = vmax.f32 %v318_v18, %v319_v22  ;;  %v299_v29 = vmax.f32 %v297_v19, %v298_v23  ;;  %v290_v30 = vsel %vm282_vm6, -1e+09, %v274_v24 }
 0x185   :  { %v311_v32 = vsel %vm296_vm3, %v290_v30, -inf  ;;  %v276_v33 = vadd.f32 %v1019_v57, %v255_v26  ;;  %v258_v34 = vpop.xlane.xlu1 %257 }
 0x186   :  { %v309_v35 = vrot.slane %v308_v27, 1  ;;  %v321_v36 = vrot.slane %v320_v28, 2  ;;  %v300_v37 = vrot.slane %v299_v29, 2  ;;  %v312_v38 = vrot.slane %v311_v32, 4 }
 0x187   :  { %v292_v40 = vsel %vm284_vm7, -1e+09, %v276_v33  ;;  %v277_v41 = vadd.f32 %v1019_v57, %v258_v34  ;;  %v261_v42 = vpop.xlane.xlu0 %260 }
 0x188   :  { %v310_v43 = vmax.f32 %v308_v27, %v309_v35  ;;  %v322_v44 = vmax.f32 %v320_v28, %v321_v36  ;;  %v301_v45 = vmax.f32 %v299_v29, %v300_v37  ;;  %v313_v46 = vmax.f32 %v311_v32, %v312_v38 }
 0x189   :  { %v325_v47 = vsel %vm296_vm3, %v292_v40, -inf  ;;  %v293_v48 = vsel %vm285_vm8, -1e+09, %v277_v41  ;;  %v278_v49 = vadd.f32 %v1019_v57, %v261_v42  ;;  %v264_v50 = vpop.xlane.xlu1 %263 }
 0x18a   :  { %v354_v51 = vsub.f32 %v289_v62, %v310_v43  ;;  %v323_v52 = vrot.slane %v322_v44, 1  ;;  %v302_v53 = vrot.slane %v301_v45, 1  ;;  %v314_v54 = vrot.slane %v313_v46, 2 }
 0x18b   :  { %v326_v55 = vrot.slane %v325_v47, 4  ;;  %v332_v56 = vsel %vm296_vm3, %v293_v48, -inf  ;;  %v294_v58 = vsel %vm286_vm9, -1e+09, %v278_v49  ;;  %v279_v59 = vadd.f32 %v1019_v57, %v264_v50 }
 0x18c   :  { %v363_v60 = vmul.f32 1.442695, %v354_v51  ;;  %v324_v61 = vmax.f32 %v322_v44, %v323_v52  ;;  %v303_v63 = vmax.f32 %v301_v45, %v302_v53  ;;  %v315_v0 = vmax.f32 %v313_v46, %v314_v54 }
 0x18d   :  { %v327_v1 = vmax.f32 %v325_v47, %v326_v55  ;;  %v333_v2 = vrot.slane %v332_v56, 4  ;;  %v339_v4 = vsel %vm296_vm3, %v294_v58, -inf  ;;  %v295_v62 = vsel %vm287_vm10, -1e+09, %v279_v59 }
 0x18e   :  { %786 = vpow2.f32 %v363_v60  ;;  %v356_v5 = vsub.f32 %v1034_v15, %v324_v61  ;;  %v353_v13 = vsub.f32 %v1036_v16, %v303_v63  ;;  %v316_v14 = vrot.slane %v315_v0, 1 }
 0x18f   :  { %v328_v17 = vrot.slane %v327_v1, 2  ;;  %v334_v18 = vmax.f32 %v332_v56, %v333_v2  ;;  %v340_v19 = vrot.slane %v339_v4, 4  ;;  %v346_v57 = vsel %vm296_vm3, %v295_v62, -inf }
 0x190   :  { %v367_v20 = vmul.f32 1.442695, %v356_v5  ;;  %v361_v21 = vmul.f32 1.442695, %v353_v13  ;;  %v317_v22 = vmax.f32 %v315_v0, %v316_v14  ;;  %v347_v23 = vrot.slane %v346_v57, 4 }
 0x191   :  { %v329_v24 = vmax.f32 %v327_v1, %v328_v17  ;;  %v335_v25 = vrot.slane %v334_v18, 2  ;;  %v341_v26 = vmax.f32 %v339_v4, %v340_v19 }
 0x192   :  { %788 = vpow2.f32 %v367_v20  ;;  %v355_v27 = vsub.f32 %v290_v30, %v317_v22  ;;  %v348_v28 = vmax.f32 %v346_v57, %v347_v23 }
 0x193   :  { %790 = vpow2.f32 %v361_v21  ;;  %v330_v15 = vrot.slane %v329_v24, 1  ;;  %v336_v29 = vmax.f32 %v334_v18, %v335_v25  ;;  %v342_v16 = vrot.slane %v341_v26, 2 }
 0x194   :  { %v365_v31 = vmul.f32 1.442695, %v355_v27  ;;  %v349_v32 = vrot.slane %v348_v28, 2 }
 0x195   :  { %v331_v33 = vmax.f32 %v329_v24, %v330_v15  ;;  %v337_v34 = vrot.slane %v336_v29, 1  ;;  %v343_v35 = vmax.f32 %v341_v26, %v342_v16 }
 0x196   :  { %792 = vpow2.f32 %v365_v31  ;;  %v350_v36 = vmax.f32 %v348_v28, %v349_v32 }
 0x197   :  { %v357_v37 = vsub.f32 %v292_v40, %v331_v33  ;;  %v338_v38 = vmax.f32 %v336_v29, %v337_v34  ;;  %v344_v39 = vrot.slane %v343_v35, 1 }
 0x198   :  { %v351_v41 = vrot.slane %v350_v36, 1 }
 0x199   :  { %v369_v42 = vmul.f32 1.442695, %v357_v37  ;;  %v358_v43 = vsub.f32 %v293_v48, %v338_v38  ;;  %v345_v44 = vmax.f32 %v343_v35, %v344_v39 }
 0x19a   :  { %v352_v30 = vmax.f32 %v350_v36, %v351_v41 }
 0x19b   :  { %v787_v45 = vpop.eup %786  ;;  %794 = vpow2.f32 %v369_v42  ;;  %v371_v46 = vmul.f32 1.442695, %v358_v43  ;;  %v359_v47 = vsub.f32 %v294_v58, %v345_v44 }
 0x19c   :  { %v384_v49 = vsel %vm296_vm3, %v787_v45, 0.0  ;;  %v360_v50 = vsub.f32 %v295_v62, %v352_v30  ;;  %448 = vperm.xlu1 %785, %v787_v45  }
 0x19d   :  { %v385_v51 = vrot.slane %v384_v49, 4  ;;  %796 = vpow2.f32 %v371_v46  ;;  %v373_v52 = vmul.f32 1.442695, %v359_v47 }
 0x19e   :  { %v375_v53 = vmul.f32 1.442695, %v360_v50 }
 0x19f   :  { %v789_v40 = vpop.eup %788  ;;  %v386_v54 = vadd.f32 %v385_v51, %v384_v49  ;;  %798 = vpow2.f32 %v373_v52 }
 0x1a0   :  { %v791_v55 = vpop.eup %790  ;;  %v398_v48 = vsel %vm296_vm3, %v789_v40, 0.0  ;;  %800 = vpow2.f32 %v375_v53  ;;  %458 = vperm.xlu1 %785, %v789_v40  }
 0x1a1   :  { %v387_v56 = vrot.slane %v386_v54, 2  ;;  %v399_v59 = vrot.slane %v398_v48, 4  ;;  %v377_v58 = vsel %vm296_vm3, %v791_v55, 0.0  ;;  %443 = vperm.xlu0 %784, %v791_v55  }
 0x1a2   :  { %v378_v60 = vrot.slane %v377_v58, 4 }
 0x1a3   :  { %v793_v61 = vpop.eup %792  ;;  %v388_v63 = vadd.f32 %v387_v56, %v386_v54  ;;  %v400_v0 = vadd.f32 %v399_v59, %v398_v48 }
 0x1a4   :  { %v379_v1 = vadd.f32 %v378_v60, %v377_v58  ;;  %v391_v2 = vsel %vm296_vm3, %v793_v61, 0.0  ;;  %453 = vperm.xlu1 %785, %v793_v61  }
 0x1a5   :  { %v389_v4 = vrot.slane %v388_v63, 1  ;;  %v401_v62 = vrot.slane %v400_v0, 2  ;;  %v392_v5 = vrot.slane %v391_v2, 4 }
 0x1a6   :  { %v380_v13 = vrot.slane %v379_v1, 2 }
 0x1a7   :  { %v390_v14 = vadd.f32 %v389_v4, %v388_v63  ;;  %v402_v17 = vadd.f32 %v401_v62, %v400_v0  ;;  %v393_v18 = vadd.f32 %v392_v5, %v391_v2  ;;  %v889_v63 = vmov 0.0   ;;  %v596_v0 = vld [vmem:[#allocation6 + $0x18] sm:$0xff]  ;;  %v595_v2 = vld [vmem:[#allocation6 + $0x10] sm:$0xff]  ;;  %v594_v62 = vld [vmem:[#allocation6 + $0x8] sm:$0xff] }
 0x1a8   :  { %v795_v19 = vpop.eup %794  ;;  %v381_v57 = vadd.f32 %v380_v13, %v379_v1  ;;  %765 = vmatprep.subr.mxu1 %v889_v63  ;;  %v593_v5 = vld [vmem:[#allocation6] sm:$0xff]  ;;  %773 = vmatprep.mubr.msk.f32.mxu1 %vm890_vm11, %v889_v63 }
 0x1a9   :  { %802 = vrcp.f32 %v390_v14  ;;  %v403_v20 = vrot.slane %v402_v17, 1  ;;  %v394_v21 = vrot.slane %v393_v18, 2  ;;  %v405_v22 = vsel %vm296_vm3, %v795_v19, 0.0  ;;  %766 = vmatpush3.msra.mxu1 %v596_v0 }
 0x1aa   :  { %v797_v23 = vpop.eup %796  ;;  %v382_v24 = vrot.slane %v381_v57, 1  ;;  %v406_v25 = vrot.slane %v405_v22, 4  ;;  %767 = vmatprep.subr.mxu1 %v889_v63 }
 0x1ab   :  { %v404_v26 = vadd.f32 %v403_v20, %v402_v17  ;;  %v395_v27 = vadd.f32 %v394_v21, %v393_v18  ;;  %v412_v28 = vsel %vm296_vm3, %v797_v23, 0.0  ;;  %468 = vperm.xlu1 %785, %v797_v23   ;;  %768 = vmatpush3.msra.mxu1 %v595_v2 }
 0x1ac   :  { %v799_v15 = vpop.eup %798  ;;  %v383_v29 = vadd.f32 %v382_v24, %v381_v57  ;;  %v407_v16 = vadd.f32 %v406_v25, %v405_v22  ;;  %v413_v31 = vrot.slane %v412_v28, 4  ;;  %769 = vmatprep.subr.mxu1 %v889_v63 }
 0x1ad   :  { %v801_v32 = vpop.eup %800  ;;  %804 = vrcp.f32 %v404_v26  ;;  %v396_v33 = vrot.slane %v395_v27, 1  ;;  %v419_v34 = vsel %vm296_vm3, %v799_v15, 0.0  ;;  %770 = vmatpush3.msra.mxu1 %v594_v62 }
 0x1ae   :  { %806 = vrcp.f32 %v383_v29  ;;  %v408_v35 = vrot.slane %v407_v16, 2  ;;  %v414_v36 = vadd.f32 %v413_v31, %v412_v28  ;;  %v420_v37 = vrot.slane %v419_v34, 4  ;;  %771 = vmatprep.subr.mxu1 %v889_v63 }
 0x1af   :  { %v397_v38 = vadd.f32 %v396_v33, %v395_v27  ;;  %v426_v39 = vsel %vm296_vm3, %v801_v32, 0.0  ;;  %463 = vperm.xlu1 %785, %v795_v19   ;;  %772 = vmatpush3.msra.mxu1 %v593_v5  ;;  %vm624_vm3 = vcmask 1047559  }
 0x1b0   :  { %v409_v41 = vadd.f32 %v408_v35, %v407_v16  ;;  %v415_v42 = vrot.slane %v414_v36, 2  ;;  %v421_v43 = vadd.f32 %v420_v37, %v419_v34  ;;  %v427_v44 = vrot.slane %v426_v39, 4 }
 0x1b1   :  { %808 = vrcp.f32 %v397_v38 }
 0x1b2   :  { %v410_v30 = vrot.slane %v409_v41, 1  ;;  %v416_v45 = vadd.f32 %v415_v42, %v414_v36  ;;  %v422_v46 = vrot.slane %v421_v43, 2  ;;  %v428_v47 = vadd.f32 %v427_v44, %v426_v39 }
 0x1b3   :  { %478 = vperm.xlu1 %785, %v801_v32  }
 0x1b4   :  { %v411_v49 = vadd.f32 %v410_v30, %v409_v41  ;;  %v417_v50 = vrot.slane %v416_v45, 1  ;;  %v423_v51 = vadd.f32 %v422_v46, %v421_v43  ;;  %v429_v52 = vrot.slane %v428_v47, 2 }
 0x1b6   :  { %v803_v53 = vpop.eup %802  ;;  %810 = vrcp.f32 %v411_v49  ;;  %v418_v40 = vadd.f32 %v417_v50, %v416_v45  ;;  %v424_v54 = vrot.slane %v423_v51, 1  ;;  %v430_v55 = vadd.f32 %v429_v52, %v428_v47 }
 0x1b7   :  { %473 = vperm.xlu1 %785, %v799_v15   ;;  %552 = vperm.xlu0 %784, %v803_v53  }
 0x1b8   :  { %812 = vrcp.f32 %v418_v40  ;;  %v425_v48 = vadd.f32 %v424_v54, %v423_v51  ;;  %v431_v56 = vrot.slane %v430_v55, 1 }
 0x1ba   :  { %v805_v59 = vpop.eup %804  ;;  %814 = vrcp.f32 %v425_v48  ;;  %v432_v58 = vadd.f32 %v431_v56, %v430_v55 }
 0x1bb   :  { %v807_v60 = vpop.eup %806  ;;  %562 = vperm.xlu0 %784, %v805_v59  }
 0x1bc   :  { %816 = vrcp.f32 %v432_v58  ;;  %547 = vperm.xlu1 %785, %v807_v60  }
 0x1be   :  { %v809_v61 = vpop.eup %808 }
 0x1c0   :  { %557 = vperm.xlu1 %785, %v809_v61  }
 0x1c3   :  { %v811_v1 = vpop.eup %810 }
 0x1c4   :  { %567 = vperm.xlu1 %785, %v811_v1  }
 0x1c5   :  { %v813_v4 = vpop.eup %812 }
 0x1c6   :  { %572 = vperm.xlu0 %784, %v813_v4  }
 0x1c7   :  { %v815_v13 = vpop.eup %814 }
 0x1c8   :  { %577 = vperm.xlu1 %785, %v815_v13  }
 0x1c9   :  { %v817_v14 = vpop.eup %816 }
 0x1ca   :  { %582 = vperm.xlu0 %784, %v817_v14  }
 0x217   :  { %v449_v17 = vpop.permute.xlu1 %448 }
 0x218   :  { %v482_v20 = vmul.f32 %v449_v17, %v956_v6 }
 0x21a   :  { %v496_v24 = vsel %vm87_vm0, %v482_v20, 0.0 }
 0x21b   :  { %v459_v18 = vpop.permute.xlu1 %458  ;;  %v497_v28 = vrot.slane %v496_v24, 4 }
 0x21c   :  { %v444_v19 = vpop.permute.xlu0 %443  ;;  %v484_v25 = vmul.f32 %v459_v18, %v970_v8 }
 0x21d   :  { %v481_v57 = vmul.f32 %v444_v19, %v949_v3  ;;  %v498_v31 = vadd.f32 %v497_v28, %v496_v24 }
 0x21e   :  { %v510_v15 = vsel %vm87_vm0, %v484_v25, 0.0 }
 0x21f   :  { %v454_v21 = vpop.permute.xlu1 %453  ;;  %v489_v22 = vsel %vm87_vm0, %v481_v57, 0.0  ;;  %v511_v32 = vrot.slane %v510_v15, 4  ;;  %v499_v37 = vrot.slane %v498_v31, 2 }
 0x220   :  { %v483_v23 = vmul.f32 %v454_v21, %v961_v7  ;;  %v490_v26 = vrot.slane %v489_v22, 4 }
 0x221   :  { %v512_v38 = vadd.f32 %v511_v32, %v510_v15  ;;  %v500_v49 = vadd.f32 %v499_v37, %v498_v31 }
 0x222   :  { %v503_v27 = vsel %vm87_vm0, %v483_v23, 0.0  ;;  %v491_v3 = vadd.f32 %v490_v26, %v489_v22 }
 0x223   :  { %v504_v29 = vrot.slane %v503_v27, 4  ;;  %v513_v46 = vrot.slane %v512_v38, 2  ;;  %v501_v56 = vrot.slane %v500_v49, 1 }
 0x224   :  { %v492_v35 = vrot.slane %v491_v3, 2 }
 0x225   :  { %v505_v7 = vadd.f32 %v504_v29, %v503_v27  ;;  %v502_v62 = vadd.f32 %v501_v56, %v500_v49 }
 0x226   :  { %v469_v16 = vpop.permute.xlu1 %468 }
 0x227   :  { %v486_v6 = vmul.f32 %v469_v16, %v984_v10  ;;  %v506_v41 = vrot.slane %v505_v7, 2  ;;  %v493_v10 = vadd.f32 %v492_v35, %v491_v3 }
 0x229   :  { %v524_v33 = vsel %vm87_vm0, %v486_v6, 0.0  ;;  %v507_v52 = vadd.f32 %v506_v41, %v505_v7  ;;  %v494_v40 = vrot.slane %v493_v10, 1 }
 0x22a   :  { %v464_v34 = vpop.permute.xlu1 %463  ;;  %v525_v36 = vrot.slane %v524_v33, 4 }
 0x22b   :  { %v485_v8 = vmul.f32 %v464_v34, %v975_v9  ;;  %v508_v60 = vrot.slane %v507_v52, 1  ;;  %v495_v0 = vadd.f32 %v494_v40, %v493_v10 }
 0x22c   :  { %v526_v30 = vadd.f32 %v525_v36, %v524_v33 }
 0x22d   :  { %v517_v39 = vsel %vm87_vm0, %v485_v8, 0.0  ;;  %v509_v14 = vadd.f32 %v508_v60, %v507_v52 }
 0x22e   :  { %v518_v42 = vrot.slane %v517_v39, 4  ;;  %v479_v43 = vpop.permute.xlu1 %478  ;;  %v527_v54 = vrot.slane %v526_v30, 2 }
 0x22f   :  { %v488_v44 = vmul.f32 %v479_v43, %v998_v12  ;;  %v514_v12 = vadd.f32 %v513_v46, %v512_v38  ;;  %v726_v43 = vld [vmem:[%s1108_s7] ss:$0 sm:$0xff] }
 0x230   :  { %v519_v45 = vadd.f32 %v518_v42, %v517_v39  ;;  %v528_v4 = vadd.f32 %v527_v54, %v526_v30 }
 0x231   :  { %v538_v47 = vsel %vm87_vm0, %v488_v44, 0.0  ;;  %v515_v13 = vrot.slane %v514_v12, 1 }
 0x232   :  { %v520_v50 = vrot.slane %v519_v45, 2  ;;  %v539_v51 = vrot.slane %v538_v47, 4  ;;  %v474_v9 = vpop.permute.xlu1 %473  ;;  %v553_v58 = vpop.permute.xlu0 %552  ;;  %v529_v21 = vrot.slane %v528_v4, 1 }
 0x233   :  { %v487_v53 = vmul.f32 %v474_v9, %v989_v11  ;;  %v586_v18 = vmul.f32 %v553_v58, %v502_v62  ;;  %v516_v25 = vadd.f32 %v515_v13, %v514_v12 }
 0x234   :  { %v540_v55 = vadd.f32 %v539_v51, %v538_v47  ;;  %v521_v61 = vadd.f32 %v520_v50, %v519_v45  ;;  %v530_v3 = vadd.f32 %v529_v21, %v528_v4 }
 0x235   :  { %v531_v48 = vsel %vm87_vm0, %v487_v53, 0.0 }
 0x236   :  { %v532_v59 = vrot.slane %v531_v48, 4  ;;  %v541_v1 = vrot.slane %v540_v55, 2  ;;  %v522_v17 = vrot.slane %v521_v61, 1  ;;  %v563_v57 = vpop.permute.xlu0 %562 }
 0x237   :  { %v548_v63 = vpop.permute.xlu1 %547  ;;  %v588_v15 = vmul.f32 %v563_v57, %v516_v25 }
 0x238   :  { %v533_v2 = vadd.f32 %v532_v59, %v531_v48  ;;  %v585_v5 = vmul.f32 %v548_v63, %v495_v0  ;;  %v542_v23 = vadd.f32 %v541_v1, %v540_v55  ;;  %v523_v27 = vadd.f32 %v522_v17, %v521_v61 }
 0x23a   :  { %v534_v11 = vrot.slane %v533_v2, 2  ;;  %v613_v24 = vsel %vm612_vm12, %v586_v18, %v585_v5  ;;  %v543_v6 = vrot.slane %v542_v23, 1 }
 0x23b   :  { %v558_v19 = vpop.permute.xlu1 %557 }
 0x23c   :  { %v587_v20 = vmul.f32 %v558_v19, %v509_v14  ;;  %v535_v22 = vadd.f32 %v534_v11, %v533_v2  ;;  %v544_v36 = vadd.f32 %v543_v6, %v542_v23 }
 0x23e   :  { %v615_v26 = vsel %vm614_vm13, %v587_v20, %v613_v24  ;;  %v536_v28 = vrot.slane %v535_v22, 1 }
 0x23f   :  { %v568_v29 = vpop.permute.xlu1 %567  ;;  %v617_v31 = vsel %vm616_vm14, %v588_v15, %v615_v26 }
 0x240   :  { %v589_v16 = vmul.f32 %v568_v29, %v523_v27  ;;  %v537_v34 = vadd.f32 %v536_v28, %v535_v22 }
 0x241   :  { %v573_v32 = vpop.permute.xlu0 %572 }
 0x242   :  { %v619_v33 = vsel %vm618_vm15, %v589_v16, %v617_v31  ;;  %v590_v7 = vmul.f32 %v573_v32, %v530_v3 }
 0x243   :  { %v578_v35 = vpop.permute.xlu1 %577 }
 0x244   :  { %v591_v8 = vmul.f32 %v578_v35, %v537_v34  ;;  %v621_v37 = vsel %vm620_vm1, %v590_v7, %v619_v33 }
 0x245   :  { %v583_v38 = vpop.permute.xlu0 %582 }
 0x246   :  { %v623_v39 = vsel %vm622_vm2, %v591_v8, %v621_v37  ;;  %v592_v41 = vmul.f32 %v583_v38, %v544_v36 }
 0x248   :  { %v625_v42 = vsel %vm624_vm3, %v592_v41, %v623_v39 }
 0x249   :  { %774 = vmatmul.mubr.msk.f32.vlgmr.msra.gmra.mxu1 %vm87_vm0, %v625_v42 }
 0x309   :  { %v694_v44 = vpop.f32.mrf.mxu1 }
 0x30a   :  { %v695_v10 = vadd.f32 %v726_v43, %v694_v44 }
 0x30b   :  { %v775_v30 = vpop.f32.mrf.mxu1 }
 0x30c   :  { %698 = vst [vmem:[#allocation8] sm:$0xff] %v695_v10 }
 0x30d   :  { %869 = shalt.err (!%p866_p0)
}
 0x30e   :  { %708 = dma.vmem_to_hbm [thread:$0]  %s706_s26, 128, %s1109_s8, [#allocation5]  }
 0x30f   :  { %882 = dma.done.wait [#allocation5], 128  }
 0x310   :  { %883 = vsyncadd [#allocation5], 4294967168 }
 0x311   :  { %712 = vsyncpa [#allocation4], 1 }
 0x312   :  { %713 = vsyncpa [#allocation7], 1 }
 0x313   :  { %714 = vsyncpa [#allocation5], 1 }

</bundles_post_ra>
